<compile_context>
chip_gen: v7x
topology: tpu7x:2x2x1
jax: 0.10.0
libtpu: 0.0.40
codegen_flags: <defaults>
</compile_context>

<pallas_src>
import functools
import math

import jax
import jax.numpy as jnp
from jax.experimental import pallas as pl
from jax.experimental.pallas import tpu as pltpu


def _mha_wait_kernel(ops_ref, maskbias_ref, ws_ref, wv_ref, bv_ref, sel_ref,
                     wo_ref, bo_ref, out_ref, *, num_heads, b_blk, seq_len):
    """One grid step = B_blk batch elements; query length is 1 (the dummy token)."""
    emb = ops_ref.shape[-1]
    m_rows = b_blk * seq_len

    x = ops_ref[...].reshape(m_rows, emb)                        # (M, E) keys/values source

    # --- masked per-head logits: q.K / sqrt(hd) folded into W_score; bias+mask pre-folded ---
    s = jnp.dot(x, ws_ref[...], preferred_element_type=jnp.float32)      # (M, H)
    s = s + maskbias_ref[...].reshape(m_rows, num_heads)                  # add -1e30 mask + b_score

    # --- fused softmax over L for all heads / all batch rows in the block ---
    s3 = s.reshape(b_blk, seq_len, num_heads)                    # (B, L, H)
    m = jnp.max(s3, axis=1, keepdims=True)                       # (B, 1, H)
    e3 = jnp.exp(s3 - m)                                         # (B, L, H) unnormalized probs
    denom = jnp.sum(e3, axis=1)                                  # (B, H)

    # --- V projection + per-head weighted sum (normalization deferred) ---
    v = jnp.dot(x, wv_ref[...], preferred_element_type=jnp.float32) + bv_ref[...]   # (M, E)
    p_e = jnp.dot(e3.reshape(m_rows, num_heads), sel_ref[...],
                  preferred_element_type=jnp.float32)            # (M, E) per-channel weights
    acc = jnp.sum((p_e * v).reshape(b_blk, seq_len, emb), axis=1)          # (B, E)

    # softmax normalization (pl.reciprocal; approx=True is a further EUP micro-opt if the
    # ~1e-4 relative error is acceptable downstream)
    inv = pl.reciprocal(denom, approx=False)                     # (B, H)
    inv_e = jnp.dot(inv, sel_ref[...], preferred_element_type=jnp.float32)  # (B, E)
    attn = acc * inv_e                                           # (B, E)

    # --- output projection ---
    out = jnp.dot(attn.astype(wo_ref.dtype), wo_ref[...],
                  preferred_element_type=jnp.float32) + bo_ref[...]
    out_ref[...] = out.astype(out_ref.dtype)                     # (B, E) lane/sublane-dense


def _pick_batch_block(bs, seq_len, target_rows=256):
    """Batch elements per grid step so each matmul has >= target_rows rows (MXU fill)."""
    want = -(-target_rows // seq_len)                 # ceil(target / L)
    if want >= bs:
        return bs, bs                                 # single block covering the whole batch
    b_blk = ((want + 7) // 8) * 8                     # sublane-align the 2-D mask/out blocks
    if b_blk >= bs:
        return bs, bs
    bs_pad = -(-bs // b_blk) * b_blk
    return b_blk, bs_pad


def mha_wait_operation_encoder(ops_emb, op_scheduled, pad_mask, done, params, num_heads,
                               target_rows=256):
    """JAX wrapper: folds q/K algebra, builds the additive mask, blocks the batch."""
    bs, n_jobs, n_ops, emb = ops_emb.shape
    L = n_jobs * n_ops
    hd = emb // num_heads
    f32 = jnp.float32
    compute_dtype = ops_emb.dtype      # bf16 inputs -> bf16 MXU feeds, f32 accumulation

    dummy, wq, bq, wk, bk, wv, bv, wo, bo = params

    # --- batch-invariant query projection, folded with K projection and 1/sqrt(hd) ---
    q = dummy.astype(f32) @ wq.astype(f32) + bq.astype(f32)               # (1, E)
    q_scaled = (q / math.sqrt(hd)).reshape(emb)                            # (E,)
    w_score = (wk.astype(f32) * q_scaled[None, :]).reshape(emb, num_heads, hd).sum(-1)  # (E, H)
    b_score = (bk.astype(f32).reshape(emb) * q_scaled).reshape(num_heads, hd).sum(-1)   # (H,)

    # head-selector matrix: expands per-head (.., H) quantities to per-channel (.., E)
    sel = jnp.repeat(jnp.eye(num_heads, dtype=f32), hd, axis=1)            # (H, E)

    # --- flattened ops + additive mask (0 / -1e30), score bias folded in ---
    ops_flat = ops_emb.reshape(bs, L, emb)
    invalid = jnp.logical_or(op_scheduled, pad_mask).reshape(bs, L)
    disallow = jnp.logical_and(jnp.logical_not(done)[:, None], invalid)    # (bs, L)
    mask_add = jnp.where(disallow, -1e30, 0.0).astype(f32)                 # (bs, L)

    # --- batch blocking (pad bs so every grid step is a full block) ---
    b_blk, bs_pad = _pick_batch_block(bs, L, target_rows)
    if bs_pad > bs:
        pad = bs_pad - bs
        ops_flat = jnp.pad(ops_flat, ((0, pad), (0, 0), (0, 0)))
        mask_add = jnp.pad(mask_add, ((0, pad), (0, 0)))
    maskbias = mask_add[:, :, None] + b_score[None, None, :]               # (bs_pad, L, H)

    kernel = functools.partial(_mha_wait_kernel, num_heads=num_heads,
                               b_blk=b_blk, seq_len=L)
    const2 = lambda b: (0, 0)

    # VMEM per step: ~2 * b_blk*L*(E+H)*4 B for streamed blocks + weights — far below the
    # 64 MiB (v7x) / 128 MiB (v5e/v6e) budgets at these sizes.
    out2d = pl.pallas_call(
        kernel,
        out_shape=jax.ShapeDtypeStruct((bs_pad, emb), ops_emb.dtype),
        grid_spec=pltpu.PrefetchScalarGridSpec(
            num_scalar_prefetch=0,
            grid=(bs_pad // b_blk,),
            in_specs=[
                pl.BlockSpec((b_blk, L, emb), lambda b: (b, 0, 0)),        # ops (streamed)
                pl.BlockSpec((b_blk, L, num_heads), lambda b: (b, 0, 0)),  # mask+bias (streamed)
                pl.BlockSpec((emb, num_heads), const2),                    # W_score (resident)
                pl.BlockSpec((emb, emb), const2),                          # Wv
                pl.BlockSpec((1, emb), const2),                            # bv
                pl.BlockSpec((num_heads, emb), const2),                    # head selector
                pl.BlockSpec((emb, emb), const2),                          # Wo
                pl.BlockSpec((1, emb), const2),                            # bo
            ],
            out_specs=pl.BlockSpec((b_blk, emb), lambda b: (b, 0)),
        ),
        compiler_params=pltpu.CompilerParams(dimension_semantics=("parallel",)),
    )(ops_flat.astype(compute_dtype), maskbias,
      w_score.astype(compute_dtype), wv.astype(compute_dtype), bv.astype(f32),
      sel, wo.astype(compute_dtype), bo.astype(f32))

    return out2d[:bs].reshape(bs, 1, emb)


def _reference(ops_emb, op_scheduled, pad_mask, done, params, num_heads):
    """Pure-JAX reference matching nn.MultiheadAttention(batch_first=True)."""
    dummy, wq, bq, wk, bk, wv, bv, wo, bo = params
    bs, nj, no, emb = ops_emb.shape
    L = nj * no
    hd = emb // num_heads
    x = ops_emb.reshape(bs, L, emb).astype(jnp.float32)

    q = jnp.broadcast_to(dummy.astype(jnp.float32) @ wq + bq, (bs, 1, emb))
    k = x @ wk + bk
    v = x @ wv + bv

    qh = q.reshape(bs, 1, num_heads, hd).transpose(0, 2, 1, 3)
    kh = k.reshape(bs, L, num_heads, hd).transpose(0, 2, 1, 3)
    vh = v.reshape(bs, L, num_heads, hd).transpose(0, 2, 1, 3)

    scores = jnp.einsum('bhqd,bhkd->bhqk', qh, kh) / math.sqrt(hd)         # (bs,H,1,L)
    invalid = jnp.logical_or(op_scheduled, pad_mask).reshape(bs, L)
    disallow = jnp.logical_and(jnp.logical_not(done)[:, None], invalid)
    scores = scores + jnp.where(disallow, -1e30, 0.0)[:, None, None, :]
    p = jax.nn.softmax(scores, axis=-1)
    o = jnp.einsum('bhqk,bhkd->bhqd', p, vh).transpose(0, 2, 1, 3).reshape(bs, 1, emb)
    return (o @ wo + bo).astype(ops_emb.dtype)


def _make_params(key, emb):
    ks = jax.random.split(key, 9)
    scale = 1.0 / math.sqrt(emb)
    dummy = jax.random.normal(ks[0], (1, emb), jnp.float32)
    wq = jax.random.normal(ks[1], (emb, emb), jnp.float32) * scale
    wk = jax.random.normal(ks[2], (emb, emb), jnp.float32) * scale
    wv = jax.random.normal(ks[3], (emb, emb), jnp.float32) * scale
    wo = jax.random.normal(ks[4], (emb, emb), jnp.float32) * scale
    bq = jax.random.normal(ks[5], (1, emb), jnp.float32) * 0.01
    bk = jax.random.normal(ks[6], (1, emb), jnp.float32) * 0.01
    bv = jax.random.normal(ks[7], (1, emb), jnp.float32) * 0.01
    bo = jax.random.normal(ks[8], (1, emb), jnp.float32) * 0.01
    return (dummy, wq, bq, wk, bk, wv, bv, wo, bo)


def _make_inputs(key, bs, n_jobs, n_ops, emb):
    ks = jax.random.split(key, 4)
    ops_emb = jax.random.normal(ks[0], (bs, n_jobs, n_ops, emb), jnp.float32)
    op_scheduled = jax.random.bernoulli(ks[1], 0.3, (bs, n_jobs, n_ops))
    pad_mask = jax.random.bernoulli(ks[2], 0.2, (bs, n_jobs, n_ops))
    done = jax.random.bernoulli(ks[3], 0.5, (bs,))
    return ops_emb, op_scheduled, pad_mask, done


if __name__ == "__main__":
    emb, num_heads, n_jobs, n_ops = 32, 4, 4, 4
    key = jax.random.PRNGKey(0)
    kp, k1, k2 = jax.random.split(key, 3)
    params = _make_params(kp, emb)

    # Small case (bs=2): single grid block.
    ops_emb, sched, pad, done = _make_inputs(k1, 2, n_jobs, n_ops, emb)
    out = jax.block_until_ready(
        mha_wait_operation_encoder(ops_emb, sched, pad, done, params, num_heads))
    ref = _reference(ops_emb, sched, pad, done, params, num_heads)
    assert out.shape == (2, 1, emb)
    assert bool(jnp.allclose(out, ref, atol=2e-4, rtol=2e-4)), "mismatch vs reference (bs=2)"

    # Larger batch (bs=20): exercises batch blocking (B_blk=16 -> 256-row matmuls),
    # batch padding, and a grid of length 2 (both TCs on v7x).
    ops_emb, sched, pad, done = _make_inputs(k2, 20, n_jobs, n_ops, emb)
    out = jax.block_until_ready(
        mha_wait_operation_encoder(ops_emb, sched, pad, done, params, num_heads))
    ref = _reference(ops_emb, sched, pad, done, params, num_heads)
    assert out.shape == (20, 1, emb)
    assert bool(jnp.allclose(out, ref, atol=2e-4, rtol=2e-4)), "mismatch vs reference (bs=20)"

    print("KERNEL_OK")
</pallas_src>

<mosaic_0001>
module attributes {stable_mosaic.version = 11 : i64} {
  func.func @_mha_wait_kernel(%arg0: i32, %arg1: memref<2x16x32xf32, #tpu.memory_space<vmem>>, %arg2: memref<2x16x4xf32, #tpu.memory_space<vmem>>, %arg3: memref<32x4xf32, #tpu.memory_space<vmem>>, %arg4: memref<32x32xf32, #tpu.memory_space<vmem>>, %arg5: memref<1x32xf32, #tpu.memory_space<vmem>>, %arg6: memref<4x32xf32, #tpu.memory_space<vmem>>, %arg7: memref<32x32xf32, #tpu.memory_space<vmem>>, %arg8: memref<1x32xf32, #tpu.memory_space<vmem>>, %arg9: memref<2x32xf32, #tpu.memory_space<vmem>>) attributes {dimension_semantics = [#tpu.dimension_semantics<parallel>], iteration_bounds = array<i64: 1>, scalar_prefetch = 0 : i64, scratch_operands = 0 : i64, tpu.core_type = #tpu.core_type<tc>, window_params = [{transform_indices = @transform_0, window_bounds = array<i64: 2, 16, 32>}, {transform_indices = @transform_1, window_bounds = array<i64: 2, 16, 4>}, {pipeline_mode = #tpu.pipeline_mode<synchronous>, transform_indices = @transform_2, window_bounds = array<i64: 32, 4>}, {pipeline_mode = #tpu.pipeline_mode<synchronous>, transform_indices = @transform_3, window_bounds = array<i64: 32, 32>}, {pipeline_mode = #tpu.pipeline_mode<synchronous>, transform_indices = @transform_4, window_bounds = array<i64: 1, 32>}, {pipeline_mode = #tpu.pipeline_mode<synchronous>, transform_indices = @transform_5, window_bounds = array<i64: 4, 32>}, {pipeline_mode = #tpu.pipeline_mode<synchronous>, transform_indices = @transform_6, window_bounds = array<i64: 32, 32>}, {pipeline_mode = #tpu.pipeline_mode<synchronous>, transform_indices = @transform_7, window_bounds = array<i64: 1, 32>}, {transform_indices = @transform_8, window_bounds = array<i64: 2, 32>}]} {
    %c0 = arith.constant 0 : index
    %c0_0 = arith.constant 0 : index
    %c0_1 = arith.constant 0 : index
    %0 = vector.load %arg1[%c0, %c0_0, %c0_1] : memref<2x16x32xf32, #tpu.memory_space<vmem>>, vector<2x16x32xf32>
    %1 = vector.shape_cast %0 : vector<2x16x32xf32> to vector<32x32xf32>
    %c0_2 = arith.constant 0 : index
    %c0_3 = arith.constant 0 : index
    %2 = vector.load %arg3[%c0_2, %c0_3] : memref<32x4xf32, #tpu.memory_space<vmem>>, vector<32x4xf32>
    %cst = arith.constant dense<0.000000e+00> : vector<32x4xf32>
    %3 = tpu.matmul %1, %2, %cst {dimension_numbers = #tpu.dot_dimension_numbers<[1], [0], [0], [1], [0, 0, 1, 1], [], []>} : vector<32x32xf32>, vector<32x4xf32>, vector<32x4xf32> -> vector<32x4xf32>
    %c0_4 = arith.constant 0 : index
    %c0_5 = arith.constant 0 : index
    %c0_6 = arith.constant 0 : index
    %4 = vector.load %arg2[%c0_4, %c0_5, %c0_6] : memref<2x16x4xf32, #tpu.memory_space<vmem>>, vector<2x16x4xf32>
    %5 = vector.shape_cast %4 : vector<2x16x4xf32> to vector<32x4xf32>
    %6 = arith.addf %3, %5 : vector<32x4xf32>
    %7 = vector.shape_cast %6 : vector<32x4xf32> to vector<2x16x4xf32>
    %cst_7 = arith.constant dense<0xFF800000> : vector<2x4xf32>
    %8 = vector.multi_reduction <maximumf>, %7, %cst_7 [1] : vector<2x16x4xf32> to vector<2x4xf32>
    %9 = vector.shape_cast %8 : vector<2x4xf32> to vector<2x1x4xf32>
    %10 = vector.broadcast %9 : vector<2x1x4xf32> to vector<2x16x4xf32>
    %11 = arith.subf %7, %10 : vector<2x16x4xf32>
    %12 = math.exp %11 : vector<2x16x4xf32>
    %cst_8 = arith.constant dense<0.000000e+00> : vector<2x4xf32>
    %13 = vector.multi_reduction <add>, %12, %cst_8 [1] : vector<2x16x4xf32> to vector<2x4xf32>
    %c0_9 = arith.constant 0 : index
    %c0_10 = arith.constant 0 : index
    %14 = vector.load %arg4[%c0_9, %c0_10] : memref<32x32xf32, #tpu.memory_space<vmem>>, vector<32x32xf32>
    %cst_11 = arith.constant dense<0.000000e+00> : vector<32x32xf32>
    %15 = tpu.matmul %1, %14, %cst_11 {dimension_numbers = #tpu.dot_dimension_numbers<[1], [0], [0], [1], [0, 0, 1, 1], [], []>} : vector<32x32xf32>, vector<32x32xf32>, vector<32x32xf32> -> vector<32x32xf32>
    %c0_12 = arith.constant 0 : index
    %c0_13 = arith.constant 0 : index
    %16 = vector.load %arg5[%c0_12, %c0_13] : memref<1x32xf32, #tpu.memory_space<vmem>>, vector<1x32xf32>
    %17 = vector.broadcast %16 : vector<1x32xf32> to vector<32x32xf32>
    %18 = arith.addf %15, %17 : vector<32x32xf32>
    %19 = vector.shape_cast %12 : vector<2x16x4xf32> to vector<32x4xf32>
    %c0_14 = arith.constant 0 : index
    %c0_15 = arith.constant 0 : index
    %20 = vector.load %arg6[%c0_14, %c0_15] : memref<4x32xf32, #tpu.memory_space<vmem>>, vector<4x32xf32>
    %cst_16 = arith.constant dense<0.000000e+00> : vector<32x32xf32>
    %21 = tpu.matmul %19, %20, %cst_16 {dimension_numbers = #tpu.dot_dimension_numbers<[1], [0], [0], [1], [0, 0, 1, 1], [], []>} : vector<32x4xf32>, vector<4x32xf32>, vector<32x32xf32> -> vector<32x32xf32>
    %22 = arith.mulf %21, %18 : vector<32x32xf32>
    %23 = vector.shape_cast %22 : vector<32x32xf32> to vector<2x16x32xf32>
    %cst_17 = arith.constant dense<0.000000e+00> : vector<2x32xf32>
    %24 = vector.multi_reduction <add>, %23, %cst_17 [1] : vector<2x16x32xf32> to vector<2x32xf32>
    %25 = tpu.reciprocal %13 : vector<2x4xf32> -> vector<2x4xf32>
    %c0_18 = arith.constant 0 : index
    %c0_19 = arith.constant 0 : index
    %26 = vector.load %arg6[%c0_18, %c0_19] : memref<4x32xf32, #tpu.memory_space<vmem>>, vector<4x32xf32>
    %cst_20 = arith.constant dense<0.000000e+00> : vector<2x32xf32>
    %27 = tpu.matmul %25, %26, %cst_20 {dimension_numbers = #tpu.dot_dimension_numbers<[1], [0], [0], [1], [0, 0, 1, 1], [], []>} : vector<2x4xf32>, vector<4x32xf32>, vector<2x32xf32> -> vector<2x32xf32>
    %28 = arith.mulf %24, %27 : vector<2x32xf32>
    %c0_21 = arith.constant 0 : index
    %c0_22 = arith.constant 0 : index
    %29 = vector.load %arg7[%c0_21, %c0_22] : memref<32x32xf32, #tpu.memory_space<vmem>>, vector<32x32xf32>
    %cst_23 = arith.constant dense<0.000000e+00> : vector<2x32xf32>
    %30 = tpu.matmul %28, %29, %cst_23 {dimension_numbers = #tpu.dot_dimension_numbers<[1], [0], [0], [1], [0, 0, 1, 1], [], []>} : vector<2x32xf32>, vector<32x32xf32>, vector<2x32xf32> -> vector<2x32xf32>
    %c0_24 = arith.constant 0 : index
    %c0_25 = arith.constant 0 : index
    %31 = vector.load %arg8[%c0_24, %c0_25] : memref<1x32xf32, #tpu.memory_space<vmem>>, vector<1x32xf32>
    %32 = vector.broadcast %31 : vector<1x32xf32> to vector<2x32xf32>
    %33 = arith.addf %30, %32 : vector<2x32xf32>
    %c0_26 = arith.constant 0 : index
    %c0_27 = arith.constant 0 : index
    %34 = vector.load %arg9[%c0_26, %c0_27] : memref<2x32xf32, #tpu.memory_space<vmem>>, vector<2x32xf32>
    tpu.vector_store %arg9[%c0_26, %c0_27], %33 {strides = array<i32>} : memref<2x32xf32, #tpu.memory_space<vmem>>, vector<2x32xf32>,
    return
  }
  func.func @transform_0(%arg0: i32) -> (i32, i32, i32) {
    %c0_i32 = arith.constant 0 : i32
    %c0_i32_0 = arith.constant 0 : i32
    %c0_i32_1 = arith.constant 0 : i32
    return %arg0, %c0_i32, %c0_i32_0 : i32, i32, i32
  }
  func.func @transform_1(%arg0: i32) -> (i32, i32, i32) {
    %c0_i32 = arith.constant 0 : i32
    %c0_i32_0 = arith.constant 0 : i32
    %c0_i32_1 = arith.constant 0 : i32
    return %arg0, %c0_i32, %c0_i32_0 : i32, i32, i32
  }
  func.func @transform_2(%arg0: i32) -> (i32, i32) {
    %c0_i32 = arith.constant 0 : i32
    %c0_i32_0 = arith.constant 0 : i32
    %c0_i32_1 = arith.constant 0 : i32
    return %c0_i32, %c0_i32_0 : i32, i32
  }
  func.func @transform_3(%arg0: i32) -> (i32, i32) {
    %c0_i32 = arith.constant 0 : i32
    %c0_i32_0 = arith.constant 0 : i32
    %c0_i32_1 = arith.constant 0 : i32
    return %c0_i32, %c0_i32_0 : i32, i32
  }
  func.func @transform_4(%arg0: i32) -> (i32, i32) {
    %c0_i32 = arith.constant 0 : i32
    %c0_i32_0 = arith.constant 0 : i32
    %c0_i32_1 = arith.constant 0 : i32
    return %c0_i32, %c0_i32_0 : i32, i32
  }
  func.func @transform_5(%arg0: i32) -> (i32, i32) {
    %c0_i32 = arith.constant 0 : i32
    %c0_i32_0 = arith.constant 0 : i32
    %c0_i32_1 = arith.constant 0 : i32
    return %c0_i32, %c0_i32_0 : i32, i32
  }
  func.func @transform_6(%arg0: i32) -> (i32, i32) {
    %c0_i32 = arith.constant 0 : i32
    %c0_i32_0 = arith.constant 0 : i32
    %c0_i32_1 = arith.constant 0 : i32
    return %c0_i32, %c0_i32_0 : i32, i32
  }
  func.func @transform_7(%arg0: i32) -> (i32, i32) {
    %c0_i32 = arith.constant 0 : i32
    %c0_i32_0 = arith.constant 0 : i32
    %c0_i32_1 = arith.constant 0 : i32
    return %c0_i32, %c0_i32_0 : i32, i32
  }
  func.func @transform_8(%arg0: i32) -> (i32, i32) {
    %c0_i32 = arith.constant 0 : i32
    %c0_i32_0 = arith.constant 0 : i32
    return %arg0, %c0_i32 : i32, i32
  }
}

</mosaic_0001>

<bundles_post_ra>
// kernel: tpu_custom_call.1
= control target key start
LH: loop header
LB: loop body
LE: loop exit
PB: predicated region body
PF: predicated region fallthrough
CT: control target
= control target key end

     0   :  { %13 = vsyncpa [#allocation3], 0  ;;  %s967_s0 = inlined_call_operand.vmem [shape: f32[2,16,32], index: 0, kind: input, shape index: {}]   ;;  %s968_s1 = inlined_call_operand.vmem [shape: f32[2,16,4], index: 1, kind: input, shape index: {}]   ;;  %s969_s2 = inlined_call_operand.vmem [shape: f32[32,4], index: 2, kind: input, shape index: {}]   ;;  %s970_s3 = inlined_call_operand.vmem [shape: f32[32,32], index: 3, kind: input, shape index: {}]   ;;  %s971_s4 = inlined_call_operand.vmem [shape: f32[1,32], index: 4, kind: input, shape index: {}]   ;;  %s972_s5 = inlined_call_operand.hbm [shape: f32[4,32], index: 5, kind: input, shape index: {}]   ;;  %s973_s6 = inlined_call_operand.vmem [shape: f32[32,32], index: 6, kind: input, shape index: {}]   ;;  %s974_s7 = inlined_call_operand.vmem [shape: f32[1,32], index: 7, kind: input, shape index: {}]   ;;  %s975_s8 = inlined_call_operand.hbm [shape: f32[2,32], index: 8, kind: output, shape index: {}]  }
   0x1   :  { %14 = vsyncpa [#allocation4], 0  ;;  %s794_s27 = smov [#allocation2]   ;;  %s746_s9 = scalar_lea.hbm %s972_s5, 64 }
   0x2   :  { %s31_s28 = sshll.u32 %s794_s27, 4  ;;  %p747_p0 = scmp.ne.s32.totalorder %s972_s5, %s746_s9  ;;  %s32_s28 = int_to_ptr.vmem [resolvable:$true] %s31_s28 }
   0x3   :  { %p750_p1 = scmp.lt.u32.totalorder %s746_s9, %s972_s5 }
   0x5   :  { %p752_p2 = pnand %p750_p1, %p747_p0 }
   0x7   :  { %755 = shalt.err (!%p752_p2)
}
   0x8   :  { %s756_s14 = scalar_lea.vmem %s32_s28, 64  ;;  %p761_p4 = scmp.lt.s32.totalorder %s32_s28, %s32_s28 }
   0x9   :  { %p757_p3 = scmp.ne.s32.totalorder %s32_s28, %s756_s14  ;;  %p762_p5 = scmp.lt.s32.totalorder %s756_s14, %s756_s14 }
   0xb   :  { %p763_p6 = por %p762_p5, %p761_p4 }
   0xd   :  { %p764_p7 = pnand %p763_p6, %p757_p3 }
   0xf   :  { %767 = shalt.err (!%p764_p7)
}
  0x10   :  { %34 = dma.hbm_to_vmem [thread:$0]  %s972_s5, 64, %s32_s28, [#allocation3]  }
  0x11   :  { %790 = dma.done.wait [#allocation3], 64  }
  0x12   :  { %791 = vsyncadd [#allocation3], 4294967232  ;;  %vm54_vm0 = vcmask 261120   ;;  %v46_v0 = vld [vmem:[%s969_s2] sm:$0xff]  ;;  %v47_v1 = vld [vmem:[%s969_s2 + $0x8] sm:$0xff]  ;;  %vm310_vm1 = vcmask 1043456  }
  0x13   :  { %v48_v2 = vld [vmem:[%s969_s2 + $0x10] sm:$0xff]  ;;  %v707_v3 = vpack.c.bf16 %v47_v1, %v46_v0  ;;  %v49_v4 = vld [vmem:[%s969_s2 + $0x18] sm:$0xff]  ;;  %v42_v5 = vld [vmem:[%s967_s0] sm:$0xff]  ;;  %v795_v17 = vmov 0.0   ;;  %vm796_vm2 = vmmov 0   ;;  %vm152_vm3 = vcmask 31744  }
  0x14   :  { %v711_v6 = vpack.c.bf16 %v49_v4, %v48_v2  ;;  %663 = vmatprep.mubr.msk.f32.mxu0 %vm54_vm0, %v42_v5  ;;  %677 = vmatprep.mubr.msk.f32.mxu1 %vm54_vm0, %v42_v5  ;;  %v43_v7 = vld [vmem:[%s967_s0 + $0x8] sm:$0xff]  ;;  %v44_v8 = vld [vmem:[%s967_s0 + $0x10] sm:$0xff]  ;;  %v45_v9 = vld [vmem:[%s967_s0 + $0x18] sm:$0xff]  ;;  %vm425_vm4 = vcmask 1041409   ;;  %s798_s30 = smov [#allocation5]   ;;  %vm592_vm5 = vcmask 254976  }
  0x15   :  { %708 = vmatprep.subr.bf16.mxu0 %v707_v3  ;;  %v201_v10 = vld [vmem:[%s970_s3] sm:$0xff]  ;;  %v202_v11 = vld [vmem:[%s970_s3 + $0x8] sm:$0xff]  ;;  %v203_v13 = vld [vmem:[%s970_s3 + $0x10] sm:$0xff]  ;;  %s600_s9 = sshll.u32 %s798_s30, 4  ;;  %s601_s9 = int_to_ptr.vmem [resolvable:$true] %s600_s9 }
  0x16   :  { %710 = vmatpush3.bf16.msra.mxu0 %v707_v3  ;;  %v715_v12 = vpack.c.bf16 %v202_v11, %v201_v10  ;;  %v204_v14 = vld [vmem:[%s970_s3 + $0x18] sm:$0xff]  ;;  %v297_v16 = vld [vmem:[#allocation2] sm:$0xf]  ;;  %v51_v18 = vld [vmem:[%s968_s1 + $0x8] sm:$0xff]  ;;  %s768_s10 = scalar_lea.vmem %s601_s9, 32  ;;  %p773_p9 = scmp.lt.s32.totalorder %s601_s9, %s601_s9 }
  0x17   :  { %712 = vmatprep.subr.bf16.mxu0 %v711_v6  ;;  %v719_v15 = vpack.c.bf16 %v204_v14, %v203_v13  ;;  %v50_v19 = vld [vmem:[%s968_s1] sm:$0xff]  ;;  %v53_v24 = vld [vmem:[%s968_s1 + $0x18] sm:$0xff]  ;;  %v52_v26 = vld [vmem:[%s968_s1 + $0x10] sm:$0xff]  ;;  %p769_p8 = scmp.ne.s32.totalorder %s601_s9, %s768_s10  ;;  %p774_p10 = scmp.lt.s32.totalorder %s768_s10, %s768_s10 }
  0x18   :  { %716 = vmatprep.subr.bf16.mxu1 %v715_v12 }
  0x19   :  { %718 = vmatpush3.bf16.msra.mxu1 %v715_v12  ;;  %p775_p11 = por %p774_p10, %p773_p9 }
  0x1a   :  { %714 = vmatpush3.bf16.msra.mxu0 %v711_v6  ;;  %720 = vmatprep.subr.bf16.mxu1 %v719_v15 }
  0x1b   :  { %683 = vmatprep.subr.msk.mxu0 %vm310_vm1, %v297_v16  ;;  %p776_p12 = pnand %p775_p11, %p769_p8 }
  0x1d   :  { %664 = vmatmul.mubr.msk.f32.vlgmr.msra.gmra.mrb[0].mxu0 %vm54_vm0, %v43_v7  ;;  %722 = vmatpush3.bf16.msra.mxu1 %v719_v15 }
  0x1e   :  { %666 = vmatprep.mubr.msk.f32.mxu0 %vm54_vm0, %v44_v8  ;;  %684 = vmatpush3.msk.msra.mxu0 %vm310_vm1, %v297_v16 }
  0x1f   :  { %691 = vmatprep.subr.mxu1 %v795_v17 }
  0x20   :  { %678 = vmatmul.mubr.msk.f32.vlgmr.msra.gmra.mrb[0].mxu1 %vm54_vm0, %v43_v7 }
  0x21   :  { %667 = vmatmul.mubr.msk.f32.gmra.mrb[2].mxu0 %vm54_vm0, %v45_v9  ;;  %680 = vmatprep.mubr.msk.f32.mxu1 %vm54_vm0, %v44_v8 }
  0x22   :  { %692 = vmatpush3.msk.msra.mxu1 %vm310_vm1, %v297_v16 }
  0x24   :  { %681 = vmatmul.mubr.msk.f32.gmra.mrb[2].mxu1 %vm54_vm0, %v45_v9 }
  0x25   :  { %693 = vmatprep.mubr.msk.f32.mxu1 %vm796_vm2, %v795_v17 }
  0xf0   :  { %v665_v20 = vpop.f32.mrb[0].mxu0 }
  0xf1   :  { %v139_v21 = vadd.f32 %v665_v20, %v51_v18  ;;  %v133_v22 = vpop.f32.mrb[1].mxu0 }
  0xf2   :  { %v134_v23 = vadd.f32 %v133_v22, %v50_v19  ;;  %v505_v22 = vld [vmem:[%s973_s6] sm:$0xff] }
  0xf3   :  { %v154_v25 = vsel %vm152_vm3, %v139_v21, -inf }
  0xf4   :  { %v153_v27 = vsel %vm152_vm3, %v134_v23, -inf  ;;  %v668_v28 = vpop.f32.mrb[2].mxu0 }
  0xf5   :  { %v155_v29 = vmax.f32 %v153_v27, %v154_v25  ;;  %v149_v30 = vadd.f32 %v668_v28, %v53_v24  ;;  %v143_v31 = vpop.f32.mrb[3].mxu0  ;;  %v507_v25 = vld [vmem:[%s973_s6 + $0x10] sm:$0xff]  ;;  %v613_v28 = vld [vmem:[%s971_s4] ss:$0 sm:$0xff] }
  0xf6   :  { %v144_v32 = vadd.f32 %v143_v31, %v52_v26  ;;  %v508_v26 = vld [vmem:[%s973_s6 + $0x18] sm:$0xff] }
  0xf7   :  { %v156_v33 = vrot.slane %v155_v29, 4  ;;  %v163_v34 = vsel %vm152_vm3, %v149_v30, -inf  ;;  %v727_v27 = vpack.c.bf16 %v508_v26, %v507_v25 }
  0xf8   :  { %v162_v35 = vsel %vm152_vm3, %v144_v32, -inf }
  0xf9   :  { %v157_v36 = vmax.f32 %v155_v29, %v156_v33  ;;  %v164_v37 = vmax.f32 %v162_v35, %v163_v34 }
  0xfb   :  { %v158_v38 = vrot.slane %v157_v36, 2  ;;  %v165_v39 = vrot.slane %v164_v37, 4 }
  0xfd   :  { %v159_v40 = vmax.f32 %v157_v36, %v158_v38  ;;  %v166_v41 = vmax.f32 %v164_v37, %v165_v39 }
  0xff   :  { %v160_v42 = vrot.slane %v159_v40, 1  ;;  %v167_v43 = vrot.slane %v166_v41, 2 }
 0x101   :  { %v161_v44 = vmax.f32 %v159_v40, %v160_v42  ;;  %v168_v45 = vmax.f32 %v166_v41, %v167_v43 }
 0x103   :  { %v171_v46 = vsub.f32 %v134_v23, %v161_v44  ;;  %v172_v47 = vsub.f32 %v139_v21, %v161_v44  ;;  %v169_v48 = vrot.slane %v168_v45, 1  ;;  %v797_v21 = vmov 0.0|0.0   ;;  %v506_v23 = vld [vmem:[%s973_s6 + $0x8] sm:$0xff] }
 0x104   :  { %723 = vmatprep.subr.bf16.mxu0 %v797_v21  ;;  %v724_v24 = vpack.c.bf16 %v506_v23, %v505_v22 }
 0x105   :  { %v175_v49 = vmul.f32 1.442695, %v171_v46  ;;  %v177_v50 = vmul.f32 1.442695, %v172_v47  ;;  %v170_v51 = vmax.f32 %v168_v45, %v169_v48 }
 0x107   :  { %734 = vpow2.f32 %v175_v49  ;;  %v173_v52 = vsub.f32 %v144_v32, %v170_v51  ;;  %v174_v53 = vsub.f32 %v149_v30, %v170_v51 }
 0x108   :  { %736 = vpow2.f32 %v177_v50 }
 0x109   :  { %v179_v54 = vmul.f32 1.442695, %v173_v52  ;;  %v181_v55 = vmul.f32 1.442695, %v174_v53 }
 0x10b   :  { %738 = vpow2.f32 %v179_v54 }
 0x10c   :  { %740 = vpow2.f32 %v181_v55 }
 0x111   :  { %v735_v56 = vpop.eup %734 }
 0x112   :  { %v737_v57 = vpop.eup %736  ;;  %v183_v58 = vsel %vm152_vm3, %v735_v56, 0.0  ;;  %685 = vmatprep.mubr.msk.f32.mxu0 %vm152_vm3, %v735_v56 }
 0x113   :  { %v184_v59 = vsel %vm152_vm3, %v737_v57, 0.0  ;;  %686 = vmatmul.mubr.msk.f32.vlgmr.msra.gmra.mrb[4].mxu0 %vm152_vm3, %v737_v57 }
 0x114   :  { %v185_v60 = vadd.f32 %v184_v59, %v183_v58  ;;  %725 = vmatpush3.bf16.msra.mxu0 %v724_v24 }
 0x115   :  { %v739_v61 = vpop.eup %738  ;;  %726 = vmatprep.subr.bf16.mxu0 %v797_v21 }
 0x116   :  { %v741_v62 = vpop.eup %740  ;;  %v186_v63 = vrot.slane %v185_v60, 4  ;;  %v192_v0 = vsel %vm152_vm3, %v739_v61, 0.0  ;;  %688 = vmatprep.mubr.msk.f32.mxu0 %vm152_vm3, %v739_v61 }
 0x117   :  { %v193_v1 = vsel %vm152_vm3, %v741_v62, 0.0  ;;  %689 = vmatmul.mubr.msk.f32.gmra.mrb[6].mxu0 %vm152_vm3, %v741_v62 }
 0x118   :  { %v187_v2 = vadd.f32 %v186_v63, %v185_v60  ;;  %v194_v3 = vadd.f32 %v193_v1, %v192_v0  ;;  %704 = vmatprep.mubr.msk.f32.mxu0 %vm796_vm2, %v795_v17  ;;  %v679_v17 = vpop.f32.mrb[0].mxu1  ;;  %728 = vmatpush3.bf16.msra.mxu0 %v727_v27 }
 0x119   :  { %v278_v18 = vpop.f32.mrb[1].mxu1  ;;  %v284_v29 = vadd.f32 %v679_v17, %v613_v28 }
 0x11a   :  { %v188_v4 = vrot.slane %v187_v2, 2  ;;  %v195_v5 = vrot.slane %v194_v3, 4  ;;  %v682_v19 = vpop.f32.mrb[2].mxu1  ;;  %v279_v30 = vadd.f32 %v613_v28, %v278_v18 }
 0x11b   :  { %v288_v20 = vpop.f32.mrb[3].mxu1  ;;  %v294_v34 = vadd.f32 %v682_v19, %v613_v28 }
 0x11c   :  { %v189_v6 = vadd.f32 %v188_v4, %v187_v2  ;;  %v196_v7 = vadd.f32 %v195_v5, %v194_v3  ;;  %v289_v36 = vadd.f32 %v613_v28, %v288_v20  ;;  %v625_v2 = vld [vmem:[%s974_s7] ss:$0 sm:$0xff] }
 0x11e   :  { %v190_v8 = vrot.slane %v189_v6, 1  ;;  %v197_v9 = vrot.slane %v196_v7, 2 }
 0x120   :  { %v198_v10 = vadd.f32 %v197_v9, %v196_v7  ;;  %v191_v11 = vadd.f32 %v190_v8, %v189_v6 }
 0x122   :  { %v199_v12 = vrot.slane %v198_v10, 1  ;;  %742 = vrcp.f32 %v191_v11 }
 0x124   :  { %v200_v13 = vadd.f32 %v199_v12, %v198_v10 }
 0x126   :  { %744 = vrcp.f32 %v200_v13 }
 0x12c   :  { %v743_v14 = vpop.eup %742 }
 0x130   :  { %v745_v15 = vpop.eup %744 }
 0x131   :  { %v426_v16 = vsel %vm425_vm4, %v745_v15, %v743_v14 }
 0x132   :  { %694 = vmatmul.mubr.msk.f32.vlgmr.msra.gmra.mrb[4].mxu1 %vm152_vm3, %v426_v16 }
 0x1e6   :  { %v687_v31 = vpop.f32.mrb[4].mxu0 }
 0x1e7   :  { %v400_v32 = vmul.f32 %v687_v31, %v284_v29  ;;  %v380_v33 = vpop.f32.mrb[5].mxu0 }
 0x1e8   :  { %v399_v35 = vmul.f32 %v380_v33, %v279_v30 }
 0x1e9   :  { %v404_v37 = vsel %vm54_vm0, %v400_v32, 0.0 }
 0x1ea   :  { %v403_v38 = vsel %vm54_vm0, %v399_v35, 0.0  ;;  %v690_v39 = vpop.f32.mrb[6].mxu0 }
 0x1eb   :  { %v405_v40 = vadd.f32 %v404_v37, %v403_v38  ;;  %v402_v41 = vmul.f32 %v690_v39, %v294_v34  ;;  %v390_v42 = vpop.f32.mrb[7].mxu0 }
 0x1ec   :  { %v401_v43 = vmul.f32 %v390_v42, %v289_v36 }
 0x1ed   :  { %v413_v44 = vsel %vm54_vm0, %v402_v41, 0.0  ;;  %v406_v47 = vrot.slane %v405_v40, 4 }
 0x1ee   :  { %v412_v45 = vsel %vm54_vm0, %v401_v43, 0.0 }
 0x1ef   :  { %v414_v46 = vadd.f32 %v413_v44, %v412_v45  ;;  %v407_v49 = vadd.f32 %v406_v47, %v405_v40 }
 0x1f1   :  { %v415_v48 = vrot.slane %v414_v46, 4  ;;  %v408_v51 = vrot.slane %v407_v49, 2 }
 0x1f3   :  { %v416_v50 = vadd.f32 %v415_v48, %v414_v46  ;;  %v409_v53 = vadd.f32 %v408_v51, %v407_v49 }
 0x1f5   :  { %v417_v52 = vrot.slane %v416_v50, 2  ;;  %v410_v55 = vrot.slane %v409_v53, 1 }
 0x1f7   :  { %v418_v54 = vadd.f32 %v417_v52, %v416_v50  ;;  %v411_v57 = vadd.f32 %v410_v55, %v409_v53 }
 0x1f9   :  { %v419_v56 = vrot.slane %v418_v54, 1 }
 0x1fb   :  { %v420_v59 = vadd.f32 %v419_v56, %v418_v54 }
 0x205   :  { %v495_v58 = vpop.f32.mrb[4].mxu1 }
 0x206   :  { %v500_v60 = vrot.slane %v495_v58, 1  ;;  %v503_v61 = vmul.f32 %v495_v58, %v411_v57  ;;  %v695_v62 = vpop.f32.mrb[5].mxu1 }
 0x208   :  { %v504_v63 = vmul.f32 %v500_v60, %v420_v59 }
 0x20a   :  { %v518_v0 = vrot.slane %v504_v63, 7 }
 0x20c   :  { %v519_v1 = vsel %vm425_vm4, %v518_v0, %v503_v61 }
 0x20d   :  { %705 = vmatmul.mubr.msk.f32.vlgmr.msra.gmra.mrb[8].mxu0 %vm54_vm0, %v519_v1 }
 0x2e0   :  { %v588_v3 = vpop.f32.mrb[8].mxu0 }
 0x2e1   :  { %v589_v4 = vadd.f32 %v625_v2, %v588_v3  ;;  %v706_v5 = vpop.f32.mrb[9].mxu0 }
 0x2e3   :  { %593 = vst.msk [vmem:[#allocation5] sm:$0x3] %vm592_vm5, %v589_v4 }
 0x2e4   :  { %779 = shalt.err (!%p776_p12)
}
 0x2e5   :  { %s780_s13 = scalar_lea.hbm %s975_s8, 32 }
 0x2e6   :  { %p781_p13 = scmp.ne.s32.totalorder %s975_s8, %s780_s13  ;;  %p784_p0 = scmp.lt.u32.totalorder %s780_s13, %s975_s8 }
 0x2e8   :  { %p786_p1 = pnand %p784_p0, %p781_p13 }
 0x2ea   :  { %789 = shalt.err (!%p786_p1)
}
 0x2eb   :  { %603 = dma.vmem_to_hbm [thread:$0]  %s601_s9, 32, %s975_s8, [#allocation4]  }
 0x2ec   :  { %792 = dma.done.wait [#allocation4], 32  }
 0x2ed   :  { %793 = vsyncadd [#allocation4], 4294967264 }
 0x2ee   :  { %607 = vsyncpa [#allocation3], 1 }
 0x2ef   :  { %608 = vsyncpa [#allocation4], 1 }

</bundles_post_ra>
